<compile_context>
chip_gen: v7x
topology: tpu7x:2x2x1
jax: 0.10.0
libtpu: 0.0.40
codegen_flags: <defaults>
</compile_context>

<pallas_src>
import functools

import numpy as np

import jax
import jax.numpy as jnp
from jax.experimental import pallas as pl
from jax.experimental.pallas import tpu as pltpu

IN_FEATURES = 163
HIDDEN = 256
FC_OUTPUT_SIZE = 256


def _round_up(n, m):
    return ((n + m - 1) // m) * m


def _num_tensorcores():
    """Best-effort TensorCore count of the default device (1 if unknown)."""
    try:
        dev = jax.devices()[0]
        for attr in ("num_cores", "core_count"):
            n = getattr(dev, attr, None)
            if isinstance(n, int) and n > 0:
                return n
        kind = str(getattr(dev, "device_kind", "")).lower()
        if ("v7" in kind) or ("v4" in kind) or ("v5p" in kind):
            return 2  # megacore / dual-TC parts
    except Exception:
        pass
    return 1


def _default_block_b(B, use_bf16=True, desired=1024):
    """HBM-roofline-friendly batch tile.

    Large tiles amortize the ~0.35us per-grid-step overhead (256-tile ~63% of
    HBM roofline vs ~85%+ at 512-1024 on v6e).  bf16 tiles are rounded to a
    multiple of 16 (sublane packing).  On multi-TensorCore parts (v7x /
    megacore) prefer >=2 grid steps so the "parallel" axis can shard across
    cores; on single-core v5e/v6e the halving is skipped.
    """
    align = 16 if use_bf16 else 8
    b_al = _round_up(max(int(B), 1), align)
    bb = min(desired, b_al)
    if _num_tensorcores() >= 2 and b_al > align:
        if -(-b_al // bb) < 2:  # single grid step -> one TensorCore idle
            bb = _round_up((b_al + 1) // 2, align)
    return bb


def _fc_kernel(x_ref, w1_ref, b1_ref, w2_ref, b2_ref, w3_ref, b3_ref,
               o_ref, xpad_ref):
    cdt = w1_ref.dtype  # compute dtype of the MXU operands (bf16 or f32)

    # Stage the raw x tile into a lane-aligned (block_b, 256) buffer in the
    # compute dtype.  Columns [163:256) are zero, so the padded contraction
    # contributes nothing.  Zeroed every step: trivial VMEM stores, and safe
    # even when the "parallel" grid axis is sharded across TensorCores
    # (no reliance on a program_id==0 init).
    xpad_ref[...] = jnp.zeros_like(xpad_ref)
    xpad_ref[:, :IN_FEATURES] = x_ref[...].astype(cdt)

    # Layer 1: Linear(163 -> 256) + ReLU  (K zero-padded to 256 for the MXU)
    h = jnp.dot(xpad_ref[...], w1_ref[...], preferred_element_type=jnp.float32)
    h = jnp.maximum(h + b1_ref[...], 0.0)
    # TODO(synk): Dropout(0.2) is identity in eval mode; training-mode dropout
    # (pltpu.prng_random_bits mask + 1/(1-p) scale) is not implemented here.

    # Layer 2: Linear(256 -> 256) + ReLU
    h = jnp.dot(h.astype(cdt), w2_ref[...], preferred_element_type=jnp.float32)
    h = jnp.maximum(h + b2_ref[...], 0.0)

    # Layer 3: Linear(256 -> 256) + ReLU
    h = jnp.dot(h.astype(cdt), w3_ref[...], preferred_element_type=jnp.float32)
    h = jnp.maximum(h + b3_ref[...], 0.0)

    o_ref[...] = h.astype(o_ref.dtype)


@functools.partial(jax.jit, static_argnames=("block_b", "use_bf16", "out_dtype"))
def _fc_forward_impl(x, w1, b1, w2, b2, w3, b3, *, block_b, use_bf16, out_dtype):
    B, K = x.shape
    assert K == IN_FEATURES, (B, K)
    K_pad = _round_up(K, 128)  # 163 -> 256: aligned MXU contraction
    cdt = jnp.bfloat16 if use_bf16 else jnp.float32

    # Weights are tiny (~190-380 KiB); padding/casting them in the wrapper is
    # negligible HBM traffic.  x itself is left untouched (no extra HBM pass).
    w1p = jnp.pad(w1, ((0, K_pad - K), (0, 0))).astype(cdt)
    w2c = w2.astype(cdt)
    w3c = w3.astype(cdt)
    b1r = b1.reshape(1, -1).astype(jnp.float32)
    b2r = b2.reshape(1, -1).astype(jnp.float32)
    b3r = b3.reshape(1, -1).astype(jnp.float32)

    grid = (pl.cdiv(B, block_b),)  # ragged last block is masked by Pallas
    full = lambda i: (0, 0)        # weights/biases are not tiled over the grid

    cdt_bytes = 2 if use_bf16 else 4
    out_bytes = np.dtype(out_dtype).itemsize
    wsize = K_pad * HIDDEN + HIDDEN * HIDDEN + HIDDEN * FC_OUTPUT_SIZE
    cost = pl.CostEstimate(
        flops=2 * B * wsize,
        transcendentals=0,
        bytes_accessed=(B * K * x.dtype.itemsize
                        + wsize * cdt_bytes
                        + 3 * HIDDEN * 4
                        + B * FC_OUTPUT_SIZE * out_bytes),
    )

    return pl.pallas_call(
        _fc_kernel,
        out_shape=jax.ShapeDtypeStruct((B, FC_OUTPUT_SIZE), out_dtype),
        grid_spec=pltpu.PrefetchScalarGridSpec(
            num_scalar_prefetch=0,
            grid=grid,
            in_specs=[
                pl.BlockSpec((block_b, K), lambda i: (i, 0)),  # x: raw, unpadded
                pl.BlockSpec((K_pad, HIDDEN), full),
                pl.BlockSpec((1, HIDDEN), full),
                pl.BlockSpec((HIDDEN, HIDDEN), full),
                pl.BlockSpec((1, HIDDEN), full),
                pl.BlockSpec((HIDDEN, FC_OUTPUT_SIZE), full),
                pl.BlockSpec((1, FC_OUTPUT_SIZE), full),
            ],
            out_specs=pl.BlockSpec((block_b, FC_OUTPUT_SIZE), lambda i: (i, 0)),
            scratch_shapes=[pltpu.VMEM((block_b, K_pad), cdt)],
        ),
        compiler_params=pltpu.CompilerParams(
            dimension_semantics=("parallel",),
        ),
        cost_estimate=cost,
    )(x, w1p, b1r, w2c, b2r, w3c, b3r)


def fc_forward(x, w1, b1, w2, b2, w3, b3, *, block_b=None, use_bf16=True,
               out_dtype=jnp.float32):
    """Fused FC forward.  use_bf16=True uses bf16 MXU operands with f32
    accumulation (~1e-2 deviation from a pure-f32 PyTorch FC); use_bf16=False
    is the f32-parity path.  out_dtype=jnp.bfloat16 halves output HBM traffic
    if the consumer tolerates it."""
    if block_b is None:
        block_b = _default_block_b(x.shape[0], use_bf16=use_bf16)
    return _fc_forward_impl(
        x, w1, b1, w2, b2, w3, b3,
        block_b=int(block_b), use_bf16=bool(use_bf16), out_dtype=out_dtype)


def init_params(key):
    """Deterministic init mimicking nn.Linear's uniform(-1/sqrt(fan_in), +)."""
    ks = jax.random.split(key, 6)

    def linear_init(kw, kb, fan_in, fan_out):
        bound = 1.0 / jnp.sqrt(fan_in)
        # stored as (in, out) so the kernel does x @ W
        w = jax.random.uniform(kw, (fan_in, fan_out), jnp.float32, -bound, bound)
        b = jax.random.uniform(kb, (fan_out,), jnp.float32, -bound, bound)
        return w, b

    w1, b1 = linear_init(ks[0], ks[1], IN_FEATURES, HIDDEN)
    w2, b2 = linear_init(ks[2], ks[3], HIDDEN, HIDDEN)
    w3, b3 = linear_init(ks[4], ks[5], HIDDEN, FC_OUTPUT_SIZE)
    return w1, b1, w2, b2, w3, b3


def reference_forward(x, w1, b1, w2, b2, w3, b3):
    h = jnp.maximum(x @ w1 + b1, 0.0)
    h = jnp.maximum(h @ w2 + b2, 0.0)
    h = jnp.maximum(h @ w3 + b3, 0.0)
    return h


if __name__ == "__main__":
    key = jax.random.PRNGKey(0)
    k_params, k_x1, k_x2 = jax.random.split(key, 3)

    params = init_params(k_params)

    # --- small batch, bf16 compute path (default) ---
    B1 = 8
    x1 = jax.random.normal(k_x1, (B1, IN_FEATURES), jnp.float32)
    out1 = jax.block_until_ready(fc_forward(x1, *params))
    ref1 = reference_forward(x1, *params)
    assert out1.shape == (B1, FC_OUTPUT_SIZE), out1.shape
    assert jnp.allclose(out1, ref1, atol=5e-2, rtol=5e-2), "bf16 path mismatch"

    # --- ragged batch (exercises partial-last-block masking), f32 compute ---
    B2 = 13
    x2 = jax.random.normal(k_x2, (B2, IN_FEATURES), jnp.float32)
    out2 = jax.block_until_ready(fc_forward(x2, *params, use_bf16=False))
    ref2 = reference_forward(x2, *params)
    assert out2.shape == (B2, FC_OUTPUT_SIZE), out2.shape
    assert jnp.allclose(out2, ref2, atol=1e-4, rtol=1e-4), "f32 path mismatch"

    print("KERNEL_OK")
</pallas_src>

<mosaic_0001>
module attributes {stable_mosaic.version = 11 : i64} {
  func.func @_fc_kernel(%arg0: i32, %arg1: memref<16x163xf32, #tpu.memory_space<vmem>>, %arg2: memref<256x256xbf16, #tpu.memory_space<vmem>>, %arg3: memref<1x256xf32, #tpu.memory_space<vmem>>, %arg4: memref<256x256xbf16, #tpu.memory_space<vmem>>, %arg5: memref<1x256xf32, #tpu.memory_space<vmem>>, %arg6: memref<256x256xbf16, #tpu.memory_space<vmem>>, %arg7: memref<1x256xf32, #tpu.memory_space<vmem>>, %arg8: memref<16x256xf32, #tpu.memory_space<vmem>>, %arg9: memref<16x256xbf16, #tpu.memory_space<vmem>>) attributes {dimension_semantics = [#tpu.dimension_semantics<parallel>], iteration_bounds = array<i64: 1>, scalar_prefetch = 0 : i64, scratch_operands = 1 : i64, tpu.core_type = #tpu.core_type<tc>, window_params = [{transform_indices = @transform_0, window_bounds = array<i64: 16, 163>}, {pipeline_mode = #tpu.pipeline_mode<synchronous>, transform_indices = @transform_1, window_bounds = array<i64: 256, 256>}, {pipeline_mode = #tpu.pipeline_mode<synchronous>, transform_indices = @transform_2, window_bounds = array<i64: 1, 256>}, {pipeline_mode = #tpu.pipeline_mode<synchronous>, transform_indices = @transform_3, window_bounds = array<i64: 256, 256>}, {pipeline_mode = #tpu.pipeline_mode<synchronous>, transform_indices = @transform_4, window_bounds = array<i64: 1, 256>}, {pipeline_mode = #tpu.pipeline_mode<synchronous>, transform_indices = @transform_5, window_bounds = array<i64: 256, 256>}, {pipeline_mode = #tpu.pipeline_mode<synchronous>, transform_indices = @transform_6, window_bounds = array<i64: 1, 256>}, {transform_indices = @transform_7, window_bounds = array<i64: 16, 256>}]} {
    %cst = arith.constant 0.000000e+00 : bf16
    %0 = vector.broadcast %cst : bf16 to vector<16x256xbf16>
    %c0 = arith.constant 0 : index
    %c0_0 = arith.constant 0 : index
    %1 = vector.load %arg9[%c0, %c0_0] : memref<16x256xbf16, #tpu.memory_space<vmem>>, vector<16x256xbf16>
    tpu.vector_store %arg9[%c0, %c0_0], %0 {strides = array<i32>} : memref<16x256xbf16, #tpu.memory_space<vmem>>, vector<16x256xbf16>,
    %c0_1 = arith.constant 0 : index
    %c0_2 = arith.constant 0 : index
    %2 = vector.load %arg1[%c0_1, %c0_2] : memref<16x163xf32, #tpu.memory_space<vmem>>, vector<16x163xf32>
    %3 = arith.truncf %2 : vector<16x163xf32> to vector<16x163xbf16>
    %c0_3 = arith.constant 0 : index
    %c0_4 = arith.constant 0 : index
    %4 = vector.load %arg9[%c0_3, %c0_4] : memref<16x256xbf16, #tpu.memory_space<vmem>>, vector<16x163xbf16>
    tpu.vector_store %arg9[%c0_3, %c0_4], %3 {strides = array<i32>} : memref<16x256xbf16, #tpu.memory_space<vmem>>, vector<16x163xbf16>,
    %c0_5 = arith.constant 0 : index
    %c0_6 = arith.constant 0 : index
    %5 = vector.load %arg9[%c0_5, %c0_6] : memref<16x256xbf16, #tpu.memory_space<vmem>>, vector<16x256xbf16>
    %c0_7 = arith.constant 0 : index
    %c0_8 = arith.constant 0 : index
    %6 = vector.load %arg2[%c0_7, %c0_8] : memref<256x256xbf16, #tpu.memory_space<vmem>>, vector<256x256xbf16>
    %cst_9 = arith.constant dense<0.000000e+00> : vector<16x256xf32>
    %7 = tpu.matmul %5, %6, %cst_9 {dimension_numbers = #tpu.dot_dimension_numbers<[1], [0], [0], [1], [0, 0, 1, 1], [], []>} : vector<16x256xbf16>, vector<256x256xbf16>, vector<16x256xf32> -> vector<16x256xf32>
    %c0_10 = arith.constant 0 : index
    %c0_11 = arith.constant 0 : index
    %8 = vector.load %arg3[%c0_10, %c0_11] : memref<1x256xf32, #tpu.memory_space<vmem>>, vector<1x256xf32>
    %9 = vector.broadcast %8 : vector<1x256xf32> to vector<16x256xf32>
    %10 = arith.addf %7, %9 : vector<16x256xf32>
    %cst_12 = arith.constant 0.000000e+00 : f32
    %11 = vector.broadcast %cst_12 : f32 to vector<16x256xf32>
    %12 = arith.maximumf %10, %11 : vector<16x256xf32>
    %13 = arith.truncf %12 : vector<16x256xf32> to vector<16x256xbf16>
    %c0_13 = arith.constant 0 : index
    %c0_14 = arith.constant 0 : index
    %14 = vector.load %arg4[%c0_13, %c0_14] : memref<256x256xbf16, #tpu.memory_space<vmem>>, vector<256x256xbf16>
    %cst_15 = arith.constant dense<0.000000e+00> : vector<16x256xf32>
    %15 = tpu.matmul %13, %14, %cst_15 {dimension_numbers = #tpu.dot_dimension_numbers<[1], [0], [0], [1], [0, 0, 1, 1], [], []>} : vector<16x256xbf16>, vector<256x256xbf16>, vector<16x256xf32> -> vector<16x256xf32>
    %c0_16 = arith.constant 0 : index
    %c0_17 = arith.constant 0 : index
    %16 = vector.load %arg5[%c0_16, %c0_17] : memref<1x256xf32, #tpu.memory_space<vmem>>, vector<1x256xf32>
    %17 = vector.broadcast %16 : vector<1x256xf32> to vector<16x256xf32>
    %18 = arith.addf %15, %17 : vector<16x256xf32>
    %cst_18 = arith.constant 0.000000e+00 : f32
    %19 = vector.broadcast %cst_18 : f32 to vector<16x256xf32>
    %20 = arith.maximumf %18, %19 : vector<16x256xf32>
    %21 = arith.truncf %20 : vector<16x256xf32> to vector<16x256xbf16>
    %c0_19 = arith.constant 0 : index
    %c0_20 = arith.constant 0 : index
    %22 = vector.load %arg6[%c0_19, %c0_20] : memref<256x256xbf16, #tpu.memory_space<vmem>>, vector<256x256xbf16>
    %cst_21 = arith.constant dense<0.000000e+00> : vector<16x256xf32>
    %23 = tpu.matmul %21, %22, %cst_21 {dimension_numbers = #tpu.dot_dimension_numbers<[1], [0], [0], [1], [0, 0, 1, 1], [], []>} : vector<16x256xbf16>, vector<256x256xbf16>, vector<16x256xf32> -> vector<16x256xf32>
    %c0_22 = arith.constant 0 : index
    %c0_23 = arith.constant 0 : index
    %24 = vector.load %arg7[%c0_22, %c0_23] : memref<1x256xf32, #tpu.memory_space<vmem>>, vector<1x256xf32>
    %25 = vector.broadcast %24 : vector<1x256xf32> to vector<16x256xf32>
    %26 = arith.addf %23, %25 : vector<16x256xf32>
    %cst_24 = arith.constant 0.000000e+00 : f32
    %27 = vector.broadcast %cst_24 : f32 to vector<16x256xf32>
    %28 = arith.maximumf %26, %27 : vector<16x256xf32>
    %c0_25 = arith.constant 0 : index
    %c0_26 = arith.constant 0 : index
    %29 = vector.load %arg8[%c0_25, %c0_26] : memref<16x256xf32, #tpu.memory_space<vmem>>, vector<16x256xf32>
    tpu.vector_store %arg8[%c0_25, %c0_26], %28 {strides = array<i32>} : memref<16x256xf32, #tpu.memory_space<vmem>>, vector<16x256xf32>,
    return
  }
  func.func @transform_0(%arg0: i32) -> (i32, i32) {
    %c0_i32 = arith.constant 0 : i32
    %c0_i32_0 = arith.constant 0 : i32
    return %arg0, %c0_i32 : i32, i32
  }
  func.func @transform_1(%arg0: i32) -> (i32, i32) {
    %c0_i32 = arith.constant 0 : i32
    %c0_i32_0 = arith.constant 0 : i32
    %c0_i32_1 = arith.constant 0 : i32
    return %c0_i32, %c0_i32_0 : i32, i32
  }
  func.func @transform_2(%arg0: i32) -> (i32, i32) {
    %c0_i32 = arith.constant 0 : i32
    %c0_i32_0 = arith.constant 0 : i32
    %c0_i32_1 = arith.constant 0 : i32
    return %c0_i32, %c0_i32_0 : i32, i32
  }
  func.func @transform_3(%arg0: i32) -> (i32, i32) {
    %c0_i32 = arith.constant 0 : i32
    %c0_i32_0 = arith.constant 0 : i32
    %c0_i32_1 = arith.constant 0 : i32
    return %c0_i32, %c0_i32_0 : i32, i32
  }
  func.func @transform_4(%arg0: i32) -> (i32, i32) {
    %c0_i32 = arith.constant 0 : i32
    %c0_i32_0 = arith.constant 0 : i32
    %c0_i32_1 = arith.constant 0 : i32
    return %c0_i32, %c0_i32_0 : i32, i32
  }
  func.func @transform_5(%arg0: i32) -> (i32, i32) {
    %c0_i32 = arith.constant 0 : i32
    %c0_i32_0 = arith.constant 0 : i32
    %c0_i32_1 = arith.constant 0 : i32
    return %c0_i32, %c0_i32_0 : i32, i32
  }
  func.func @transform_6(%arg0: i32) -> (i32, i32) {
    %c0_i32 = arith.constant 0 : i32
    %c0_i32_0 = arith.constant 0 : i32
    %c0_i32_1 = arith.constant 0 : i32
    return %c0_i32, %c0_i32_0 : i32, i32
  }
  func.func @transform_7(%arg0: i32) -> (i32, i32) {
    %c0_i32 = arith.constant 0 : i32
    %c0_i32_0 = arith.constant 0 : i32
    return %arg0, %c0_i32 : i32, i32
  }
}

</mosaic_0001>

<bundles_post_ra>
// kernel: _fc_forward_impl.1
= control target key start
LH: loop header
LB: loop body
LE: loop exit
PB: predicated region body
PF: predicated region fallthrough
CT: control target
= control target key end

     0   :  { %12 = vsyncpa [#allocation4], 0  ;;  %v1086_v2 = vmov 0   ;;  %vm37_vm0 = vcmask 285696   ;;  %s1460_s0 = inlined_call_operand.vmem [shape: f32[8,163], index: 0, kind: input, shape index: {}]   ;;  %s1461_s1 = inlined_call_operand.vmem [shape: bf16[256,256], index: 1, kind: input, shape index: {}]   ;;  %s1462_s2 = inlined_call_operand.vmem [shape: f32[1,256], index: 2, kind: input, shape index: {}]   ;;  %s1463_s3 = inlined_call_operand.vmem [shape: bf16[256,256], index: 3, kind: input, shape index: {}]   ;;  %s1464_s4 = inlined_call_operand.vmem [shape: f32[1,256], index: 4, kind: input, shape index: {}]   ;;  %s1465_s5 = inlined_call_operand.vmem [shape: bf16[256,256], index: 5, kind: input, shape index: {}]   ;;  %s1466_s6 = inlined_call_operand.vmem [shape: f32[1,256], index: 6, kind: input, shape index: {}]   ;;  %s1467_s7 = inlined_call_operand.hbm [shape: f32[8,256], index: 7, kind: output, shape index: {}]  }
   0x1   :  { %v918_v0 = vld [vmem:[%s1461_s1 + $0x4] ss:$8 sps:$4 sm:$0xff]   ;;  %v920_v1 = vld [vmem:[%s1461_s1] ss:$8 sps:$4 sm:$0xff]   ;;  %29 = vst [vmem:[#allocation2 + $0x8] sm:$0xff] %v1086_v2  ;;  %v33_v16 = vld [vmem:[%s1460_s0 + $0x18] sm:$0xff] }
   0x2   :  { %v921_v3 = vld [vmem:[%s1461_s1 + $0x14] ss:$8 sps:$4 sm:$0xff]   ;;  %245 = vmatprep.subr.bf16.mxu0 %v918_v0  ;;  %v923_v4 = vld [vmem:[%s1461_s1 + $0x10] ss:$8 sps:$4 sm:$0xff]   ;;  %v924_v5 = vld [vmem:[%s1461_s1 + $0x24] ss:$8 sps:$4 sm:$0xff]  }
   0x3   :  { %246 = vmatpush1.bf16.msra.mxu0 %v920_v1  ;;  %v926_v6 = vld [vmem:[%s1461_s1 + $0x20] ss:$8 sps:$4 sm:$0xff]   ;;  %v927_v7 = vld [vmem:[%s1461_s1 + $0x34] ss:$8 sps:$4 sm:$0xff]   ;;  %v929_v8 = vld [vmem:[%s1461_s1 + $0x30] ss:$8 sps:$4 sm:$0xff]  }
   0x4   :  { %247 = vmatprep.subr.bf16.mxu0 %v921_v3  ;;  %v930_v9 = vld [vmem:[%s1461_s1 + $0x44] ss:$8 sps:$4 sm:$0xff]   ;;  %v932_v10 = vld [vmem:[%s1461_s1 + $0x40] ss:$8 sps:$4 sm:$0xff]   ;;  %v933_v11 = vld [vmem:[%s1461_s1 + $0x54] ss:$8 sps:$4 sm:$0xff]  }
   0x5   :  { %v935_v12 = vld [vmem:[%s1461_s1 + $0x50] ss:$8 sps:$4 sm:$0xff]   ;;  %v936_v13 = vld [vmem:[%s1461_s1 + $0x64] ss:$8 sps:$4 sm:$0xff]   ;;  %v938_v15 = vld [vmem:[%s1461_s1 + $0x60] ss:$8 sps:$4 sm:$0xff]  }
   0x6   :  { %v31_v14 = vld [vmem:[%s1460_s0 + $0x8] sm:$0xff]  ;;  %v1181_v17 = vld [vmem:[%s1460_s0] sm:$0xff]  ;;  %v1186_v18 = vld [vmem:[%s1460_s0 + $0x10] sm:$0xff] }
   0x7   :  { %248 = vmatpush1.bf16.msra.mxu0 %v923_v4  ;;  %v35_v19 = vpack.c.bf16 %v33_v16, %v31_v14  ;;  %v34_v20 = vpack.c.bf16 %v1186_v18, %v1181_v17  ;;  %v966_v21 = vld [vmem:[%s1463_s3 + $0x4] ss:$8 sps:$4 sm:$0xff]   ;;  %v968_v22 = vld [vmem:[%s1463_s3] ss:$8 sps:$4 sm:$0xff]   ;;  %v939_v23 = vld [vmem:[%s1461_s1 + $0x74] ss:$8 sps:$4 sm:$0xff]  }
   0x8   :  { %249 = vmatprep.subr.bf16.mxu0 %v924_v5  ;;  %498 = vmatprep.subr.bf16.mxu1 %v966_v21  ;;  %v969_v24 = vld [vmem:[%s1463_s3 + $0x14] ss:$8 sps:$4 sm:$0xff]   ;;  %v971_v25 = vld [vmem:[%s1463_s3 + $0x10] ss:$8 sps:$4 sm:$0xff]   ;;  %v972_v26 = vld [vmem:[%s1463_s3 + $0x24] ss:$8 sps:$4 sm:$0xff]  }
   0x9   :  { %38 = vst.msk [vmem:[#allocation2 + $0x8] sm:$0xff] %vm37_vm0, %v35_v19  ;;  %499 = vmatpush1.bf16.msra.mxu1 %v968_v22  ;;  %v941_v27 = vld [vmem:[%s1461_s1 + $0x70] ss:$8 sps:$4 sm:$0xff]   ;;  %v942_v28 = vld [vmem:[%s1461_s1 + $0x84] ss:$8 sps:$4 sm:$0xff]  }
   0xa   :  { %500 = vmatprep.subr.bf16.mxu1 %v969_v24  ;;  %v974_v29 = vld [vmem:[%s1463_s3 + $0x20] ss:$8 sps:$4 sm:$0xff]   ;;  %v975_v30 = vld [vmem:[%s1463_s3 + $0x34] ss:$8 sps:$4 sm:$0xff]   ;;  %v977_v34 = vld [vmem:[%s1463_s3 + $0x30] ss:$8 sps:$4 sm:$0xff]  }
   0xb   :  { %250 = vmatpush1.bf16.msra.mxu0 %v926_v6  ;;  %v944_v31 = vld [vmem:[%s1461_s1 + $0x80] ss:$8 sps:$4 sm:$0xff]   ;;  %v945_v33 = vld [vmem:[%s1461_s1 + $0x94] ss:$8 sps:$4 sm:$0xff]   ;;  %v978_v35 = vld [vmem:[%s1463_s3 + $0x44] ss:$8 sps:$4 sm:$0xff]  }
   0xc   :  { %251 = vmatprep.subr.bf16.mxu0 %v927_v7  ;;  %v947_v36 = vld [vmem:[%s1461_s1 + $0x90] ss:$8 sps:$4 sm:$0xff]   ;;  %v948_v37 = vld [vmem:[%s1461_s1 + $0xa4] ss:$8 sps:$4 sm:$0xff]   ;;  %v980_v38 = vld [vmem:[%s1463_s3 + $0x40] ss:$8 sps:$4 sm:$0xff]  }
   0xd   :  { %501 = vmatpush1.bf16.msra.mxu1 %v971_v25  ;;  %v981_v39 = vld [vmem:[%s1463_s3 + $0x54] ss:$8 sps:$4 sm:$0xff]   ;;  %v950_v40 = vld [vmem:[%s1461_s1 + $0xa0] ss:$8 sps:$4 sm:$0xff]   ;;  %v983_v42 = vld [vmem:[%s1463_s3 + $0x50] ss:$8 sps:$4 sm:$0xff]  }
   0xe   :  { %502 = vmatprep.subr.bf16.mxu1 %v972_v26  ;;  %v951_v41 = vld [vmem:[%s1461_s1 + $0xb4] ss:$8 sps:$4 sm:$0xff]   ;;  %v984_v43 = vld [vmem:[%s1463_s3 + $0x64] ss:$8 sps:$4 sm:$0xff]   ;;  %v953_v44 = vld [vmem:[%s1461_s1 + $0xb0] ss:$8 sps:$4 sm:$0xff]  }
   0xf   :  { %252 = vmatpush1.bf16.msra.mxu0 %v929_v8  ;;  %v954_v45 = vld [vmem:[%s1461_s1 + $0xc4] ss:$8 sps:$4 sm:$0xff]   ;;  %v986_v46 = vld [vmem:[%s1463_s3 + $0x60] ss:$8 sps:$4 sm:$0xff]   ;;  %v987_v47 = vld [vmem:[%s1463_s3 + $0x74] ss:$8 sps:$4 sm:$0xff]  }
  0x10   :  { %253 = vmatprep.subr.bf16.mxu0 %v930_v9  ;;  %v40_v32 = vld [vmem:[#allocation2 + $0x8] sm:$0xff]  ;;  %v957_v49 = vld [vmem:[%s1461_s1 + $0xd4] ss:$8 sps:$4 sm:$0xff]   ;;  %v989_v50 = vld [vmem:[%s1463_s3 + $0x70] ss:$8 sps:$4 sm:$0xff]  }
  0x11   :  { %277 = vmatprep.mubr.bf16.mxu0 %v40_v32  ;;  %503 = vmatpush1.bf16.msra.mxu1 %v974_v29  ;;  %v956_v48 = vld [vmem:[%s1461_s1 + $0xc0] ss:$8 sps:$4 sm:$0xff]   ;;  %v990_v51 = vld [vmem:[%s1463_s3 + $0x84] ss:$8 sps:$4 sm:$0xff]   ;;  %v959_v52 = vld [vmem:[%s1461_s1 + $0xd0] ss:$8 sps:$4 sm:$0xff]  }
  0x12   :  { %504 = vmatprep.subr.bf16.mxu1 %v975_v30  ;;  %v960_v53 = vld [vmem:[%s1461_s1 + $0xe4] ss:$8 sps:$4 sm:$0xff]   ;;  %v992_v54 = vld [vmem:[%s1463_s3 + $0x80] ss:$8 sps:$4 sm:$0xff]   ;;  %v993_v55 = vld [vmem:[%s1463_s3 + $0x94] ss:$8 sps:$4 sm:$0xff]  }
  0x13   :  { %254 = vmatpush1.bf16.msra.mxu0 %v932_v10  ;;  %v962_v56 = vld [vmem:[%s1461_s1 + $0xe0] ss:$8 sps:$4 sm:$0xff]   ;;  %v963_v57 = vld [vmem:[%s1461_s1 + $0xf4] ss:$8 sps:$4 sm:$0xff]   ;;  %v995_v58 = vld [vmem:[%s1463_s3 + $0x90] ss:$8 sps:$4 sm:$0xff]  }
  0x14   :  { %255 = vmatprep.subr.bf16.mxu0 %v933_v11  ;;  %v996_v59 = vld [vmem:[%s1463_s3 + $0xa4] ss:$8 sps:$4 sm:$0xff]   ;;  %v965_v60 = vld [vmem:[%s1461_s1 + $0xf0] ss:$8 sps:$4 sm:$0xff]   ;;  %v998_v61 = vld [vmem:[%s1463_s3 + $0xa0] ss:$8 sps:$4 sm:$0xff]  }
  0x15   :  { %505 = vmatpush1.bf16.msra.mxu1 %v977_v34  ;;  %v999_v62 = vld [vmem:[%s1463_s3 + $0xb4] ss:$8 sps:$4 sm:$0xff]   ;;  %v1001_v63 = vld [vmem:[%s1463_s3 + $0xb0] ss:$8 sps:$4 sm:$0xff]   ;;  %v1002_v0 = vld [vmem:[%s1463_s3 + $0xc4] ss:$8 sps:$4 sm:$0xff]  }
  0x16   :  { %506 = vmatprep.subr.bf16.mxu1 %v978_v35  ;;  %v1004_v1 = vld [vmem:[%s1463_s3 + $0xc0] ss:$8 sps:$4 sm:$0xff]   ;;  %v1005_v2 = vld [vmem:[%s1463_s3 + $0xd4] ss:$8 sps:$4 sm:$0xff]   ;;  %v1007_v3 = vld [vmem:[%s1463_s3 + $0xd0] ss:$8 sps:$4 sm:$0xff]  }
  0x17   :  { %256 = vmatpush1.bf16.msra.mxu0 %v935_v12  ;;  %v1008_v4 = vld [vmem:[%s1463_s3 + $0xe4] ss:$8 sps:$4 sm:$0xff]   ;;  %v1010_v5 = vld [vmem:[%s1463_s3 + $0xe0] ss:$8 sps:$4 sm:$0xff]   ;;  %v1011_v6 = vld [vmem:[%s1463_s3 + $0xf4] ss:$8 sps:$4 sm:$0xff]  }
  0x18   :  { %257 = vmatprep.subr.bf16.mxu0 %v936_v13  ;;  %v1013_v7 = vld [vmem:[%s1463_s3 + $0xf0] ss:$8 sps:$4 sm:$0xff]   ;;  %v1014_v8 = vld [vmem:[%s1465_s5] ss:$8 sps:$4 sm:$0xff]   ;;  %v1016_v9 = vld [vmem:[%s1465_s5 + $0x4] ss:$8 sps:$4 sm:$0xff]  }
  0x19   :  { %507 = vmatpush1.bf16.msra.mxu1 %v980_v38  ;;  %v1019_v10 = vld [vmem:[%s1465_s5 + $0x14] ss:$8 sps:$4 sm:$0xff]   ;;  %v1017_v11 = vld [vmem:[%s1465_s5 + $0x10] ss:$8 sps:$4 sm:$0xff]   ;;  %v1022_v12 = vld [vmem:[%s1465_s5 + $0x24] ss:$8 sps:$4 sm:$0xff]  }
  0x1a   :  { %508 = vmatprep.subr.bf16.mxu1 %v981_v39  ;;  %v1020_v13 = vld [vmem:[%s1465_s5 + $0x20] ss:$8 sps:$4 sm:$0xff]   ;;  %v1025_v14 = vld [vmem:[%s1465_s5 + $0x34] ss:$8 sps:$4 sm:$0xff]   ;;  %v1028_v16 = vld [vmem:[%s1465_s5 + $0x44] ss:$8 sps:$4 sm:$0xff]  }
  0x1b   :  { %258 = vmatpush1.bf16.msra.mxu0 %v938_v15  ;;  %v1023_v15 = vld [vmem:[%s1465_s5 + $0x30] ss:$8 sps:$4 sm:$0xff]   ;;  %v1026_v17 = vld [vmem:[%s1465_s5 + $0x40] ss:$8 sps:$4 sm:$0xff]   ;;  %v1031_v18 = vld [vmem:[%s1465_s5 + $0x54] ss:$8 sps:$4 sm:$0xff]  }
  0x1c   :  { %259 = vmatprep.subr.bf16.mxu0 %v939_v23  ;;  %v1029_v19 = vld [vmem:[%s1465_s5 + $0x50] ss:$8 sps:$4 sm:$0xff]   ;;  %v1032_v21 = vld [vmem:[%s1465_s5 + $0x60] ss:$8 sps:$4 sm:$0xff]   ;;  %v1037_v22 = vld [vmem:[%s1465_s5 + $0x74] ss:$8 sps:$4 sm:$0xff]  }
  0x1d   :  { %509 = vmatpush1.bf16.msra.mxu1 %v983_v42  ;;  %v1035_v23 = vld [vmem:[%s1465_s5 + $0x70] ss:$8 sps:$4 sm:$0xff]   ;;  %v1040_v24 = vld [vmem:[%s1465_s5 + $0x84] ss:$8 sps:$4 sm:$0xff]   ;;  %v1038_v25 = vld [vmem:[%s1465_s5 + $0x80] ss:$8 sps:$4 sm:$0xff]  }
  0x1e   :  { %510 = vmatprep.subr.bf16.mxu1 %v984_v43  ;;  %v1043_v26 = vld [vmem:[%s1465_s5 + $0x94] ss:$8 sps:$4 sm:$0xff]   ;;  %v1044_v29 = vld [vmem:[%s1465_s5 + $0xa0] ss:$8 sps:$4 sm:$0xff]   ;;  %v1052_v32 = vld [vmem:[%s1465_s5 + $0xc4] ss:$8 sps:$4 sm:$0xff]  }
  0x1f   :  { %260 = vmatpush1.bf16.msra.mxu0 %v941_v27  ;;  %v1041_v27 = vld [vmem:[%s1465_s5 + $0x90] ss:$8 sps:$4 sm:$0xff]   ;;  %v1049_v30 = vld [vmem:[%s1465_s5 + $0xb4] ss:$8 sps:$4 sm:$0xff]   ;;  %v73_v39 = vld [vmem:[%s1462_s2] sm:$0x3] }
  0x20   :  { %261 = vmatprep.subr.bf16.mxu0 %v942_v28  ;;  %v1046_v28 = vld [vmem:[%s1465_s5 + $0xa4] ss:$8 sps:$4 sm:$0xff]   ;;  %v1055_v34 = vld [vmem:[%s1465_s5 + $0xd4] ss:$8 sps:$4 sm:$0xff]   ;;  %v1053_v35 = vld [vmem:[%s1465_s5 + $0xd0] ss:$8 sps:$4 sm:$0xff]  }
  0x21   :  { %511 = vmatpush1.bf16.msra.mxu1 %v986_v46 }
  0x22   :  { %512 = vmatprep.subr.bf16.mxu1 %v987_v47 }
  0x23   :  { %262 = vmatpush1.bf16.msra.mxu0 %v944_v31  ;;  %v1047_v31 = vld [vmem:[%s1465_s5 + $0xb0] ss:$8 sps:$4 sm:$0xff]  }
  0x24   :  { %263 = vmatprep.subr.bf16.mxu0 %v945_v33  ;;  %v1050_v33 = vld [vmem:[%s1465_s5 + $0xc0] ss:$8 sps:$4 sm:$0xff]  }
  0x25   :  { %513 = vmatpush1.bf16.msra.mxu1 %v989_v50 }
  0x26   :  { %514 = vmatprep.subr.bf16.mxu1 %v990_v51 }
  0x27   :  { %264 = vmatpush1.bf16.msra.mxu0 %v947_v36  ;;  %v75_v36 = vlaneseq }
  0x28   :  { %265 = vmatprep.subr.bf16.mxu0 %v948_v37 }
  0x29   :  { %515 = vmatpush1.bf16.msra.mxu1 %v992_v54  ;;  %v76_v37 = vshrl.u32 %v75_v36, 7 }
  0x2a   :  { %516 = vmatprep.subr.bf16.mxu1 %v993_v55 }
  0x2b   :  { %266 = vmatpush1.bf16.msra.mxu0 %v950_v40  ;;  %v77_v38 = vsub.s32 0, %v76_v37  ;;  %v81_v40 = vsub.s32 1, %v76_v37 }
  0x2c   :  { %267 = vmatprep.subr.bf16.mxu0 %v951_v41 }
  0x2d   :  { %517 = vmatpush1.bf16.msra.mxu1 %v995_v58  ;;  %v78_v41 = vrot.slane %v73_v39, %v77_v38  ;;  %v82_v42 = vrot.slane %v73_v39, %v81_v40  ;;  %v1056_v58 = vld [vmem:[%s1465_s5 + $0xe0] ss:$8 sps:$4 sm:$0xff]  }
  0x2e   :  { %518 = vmatprep.subr.bf16.mxu1 %v996_v59  ;;  %v1061_v59 = vld [vmem:[%s1465_s5 + $0xf4] ss:$8 sps:$4 sm:$0xff]  }
  0x2f   :  { %268 = vmatpush1.bf16.msra.mxu0 %v953_v44 }
  0x30   :  { %269 = vmatprep.subr.bf16.mxu0 %v954_v45 }
  0x31   :  { %519 = vmatpush1.bf16.msra.mxu1 %v998_v61  ;;  %v326_v61 = vld [vmem:[%s1464_s4] sm:$0x3] }
  0x32   :  { %520 = vmatprep.subr.bf16.mxu1 %v999_v62  ;;  %v331_v62 = vrot.slane %v326_v61, %v77_v38 }
  0x33   :  { %270 = vmatpush1.bf16.msra.mxu0 %v956_v48 }
  0x34   :  { %271 = vmatprep.subr.bf16.mxu0 %v957_v49 }
  0x35   :  { %521 = vmatpush1.bf16.msra.mxu1 %v1001_v63  ;;  %v335_v63 = vrot.slane %v326_v61, %v81_v40 }
  0x36   :  { %522 = vmatprep.subr.bf16.mxu1 %v1002_v0 }
  0x37   :  { %272 = vmatpush1.bf16.msra.mxu0 %v959_v52 }
  0x38   :  { %273 = vmatprep.subr.bf16.mxu0 %v960_v53 }
  0x39   :  { %523 = vmatpush1.bf16.msra.mxu1 %v1004_v1 }
  0x3a   :  { %524 = vmatprep.subr.bf16.mxu1 %v1005_v2 }
  0x3b   :  { %274 = vmatpush1.bf16.msra.mxu0 %v962_v56 }
  0x3c   :  { %275 = vmatprep.subr.bf16.mxu0 %v963_v57  ;;  %v1058_v57 = vld [vmem:[%s1465_s5 + $0xe4] ss:$8 sps:$4 sm:$0xff]  }
  0x3d   :  { %525 = vmatpush1.bf16.msra.mxu1 %v1007_v3 }
  0x3e   :  { %526 = vmatprep.subr.bf16.mxu1 %v1008_v4 }
  0x3f   :  { %276 = vmatpush1.bf16.msra.mxu0 %v965_v60  ;;  %v1059_v60 = vld [vmem:[%s1465_s5 + $0xf0] ss:$8 sps:$4 sm:$0xff]  }
  0x40   :  { %751 = vmatprep.subr.bf16.mxu0 %v1016_v9 }
  0x41   :  { %527 = vmatpush1.bf16.msra.mxu1 %v1010_v5 }
  0x42   :  { %278 = vmatmul.mubr.bf16.vlgmr.msra.gmra.mrb[0].mxu0 %v34_v20  ;;  %528 = vmatprep.subr.bf16.mxu1 %v1011_v6  ;;  %v1034_v20 = vld [vmem:[%s1465_s5 + $0x64] ss:$8 sps:$4 sm:$0xff]  }
  0x43   :  { %752 = vmatpush1.bf16.msra.mxu0 %v1014_v8 }
  0x44   :  { %753 = vmatprep.subr.bf16.mxu0 %v1019_v10 }
  0x45   :  { %529 = vmatpush1.bf16.msra.mxu1 %v1013_v7 }
  0x47   :  { %754 = vmatpush1.bf16.msra.mxu0 %v1017_v11 }
  0x48   :  { %755 = vmatprep.subr.bf16.mxu0 %v1022_v12 }
  0x4b   :  { %756 = vmatpush1.bf16.msra.mxu0 %v1020_v13 }
  0x4c   :  { %757 = vmatprep.subr.bf16.mxu0 %v1025_v14  ;;  %v579_v14 = vld [vmem:[%s1466_s6] sm:$0x3] }
  0x4f   :  { %758 = vmatpush1.bf16.msra.mxu0 %v1023_v15  ;;  %v584_v15 = vrot.slane %v579_v14, %v77_v38 }
  0x50   :  { %759 = vmatprep.subr.bf16.mxu0 %v1028_v16  ;;  %v588_v16 = vrot.slane %v579_v14, %v81_v40 }
  0x53   :  { %760 = vmatpush1.bf16.msra.mxu0 %v1026_v17 }
  0x54   :  { %761 = vmatprep.subr.bf16.mxu0 %v1031_v18 }
  0x57   :  { %762 = vmatpush1.bf16.msra.mxu0 %v1029_v19 }
  0x58   :  { %763 = vmatprep.subr.bf16.mxu0 %v1034_v20 }
  0x5b   :  { %764 = vmatpush1.bf16.msra.mxu0 %v1032_v21 }
  0x5c   :  { %765 = vmatprep.subr.bf16.mxu0 %v1037_v22 }
  0x5f   :  { %766 = vmatpush1.bf16.msra.mxu0 %v1035_v23 }
  0x60   :  { %767 = vmatprep.subr.bf16.mxu0 %v1040_v24 }
  0x63   :  { %768 = vmatpush1.bf16.msra.mxu0 %v1038_v25 }
  0x64   :  { %769 = vmatprep.subr.bf16.mxu0 %v1043_v26 }
  0x67   :  { %770 = vmatpush1.bf16.msra.mxu0 %v1041_v27 }
  0x68   :  { %771 = vmatprep.subr.bf16.mxu0 %v1046_v28 }
  0x6b   :  { %772 = vmatpush1.bf16.msra.mxu0 %v1044_v29 }
  0x6c   :  { %773 = vmatprep.subr.bf16.mxu0 %v1049_v30 }
  0x6f   :  { %774 = vmatpush1.bf16.msra.mxu0 %v1047_v31 }
  0x70   :  { %775 = vmatprep.subr.bf16.mxu0 %v1052_v32 }
  0x73   :  { %776 = vmatpush1.bf16.msra.mxu0 %v1050_v33 }
  0x74   :  { %777 = vmatprep.subr.bf16.mxu0 %v1055_v34 }
  0x77   :  { %778 = vmatpush1.bf16.msra.mxu0 %v1053_v35 }
  0x78   :  { %779 = vmatprep.subr.bf16.mxu0 %v1058_v57 }
  0x7b   :  { %780 = vmatpush1.bf16.msra.mxu0 %v1056_v58 }
  0x7c   :  { %781 = vmatprep.subr.bf16.mxu0 %v1061_v59 }
  0x7f   :  { %782 = vmatpush1.bf16.msra.mxu0 %v1059_v60 }
 0x115   :  { %v279_v43 = vpop.f32.mrb[0].mxu0 }
 0x116   :  { %v280_v44 = vadd.f32 %v279_v43, %v78_v41  ;;  %v281_v45 = vpop.f32.mrb[1].mxu0 }
 0x117   :  { %v282_v46 = vadd.f32 %v281_v45, %v82_v42  ;;  %v283_v47 = vpop.f32.mrb[2].mxu0 }
 0x118   :  { %v284_v48 = vadd.f32 %v283_v47, %v78_v41  ;;  %v285_v49 = vpop.f32.mrb[3].mxu0  ;;  %v288_v51 = vmax.f32 %v280_v44, 0.0 }
 0x119   :  { %v286_v50 = vadd.f32 %v285_v49, %v82_v42  ;;  %v289_v53 = vmax.f32 %v282_v46, 0.0 }
 0x11a   :  { %v290_v52 = vmax.f32 %v284_v48, 0.0 }
 0x11b   :  { %v291_v54 = vmax.f32 %v286_v50, 0.0 }
 0x11c   :  { %v292_v55 = vpack.c.bf16 %v290_v52, %v288_v51 }
 0x11d   :  { %v293_v56 = vpack.c.bf16 %v291_v54, %v289_v53 }
 0x11f   :  { %530 = vmatprep.mubr.bf16.mxu1 %v293_v56 }
 0x120   :  { %531 = vmatmul.mubr.bf16.vlgmr.msra.gmra.mrb[0].mxu1 %v292_v55 }
 0x1f3   :  { %v532_v0 = vpop.f32.mrb[0].mxu1 }
 0x1f4   :  { %v533_v1 = vadd.f32 %v532_v0, %v331_v62  ;;  %v534_v2 = vpop.f32.mrb[1].mxu1 }
 0x1f5   :  { %v535_v3 = vadd.f32 %v534_v2, %v335_v63  ;;  %v536_v4 = vpop.f32.mrb[2].mxu1 }
 0x1f6   :  { %v537_v5 = vadd.f32 %v536_v4, %v331_v62  ;;  %v538_v6 = vpop.f32.mrb[3].mxu1  ;;  %v541_v8 = vmax.f32 %v533_v1, 0.0 }
 0x1f7   :  { %v539_v7 = vadd.f32 %v538_v6, %v335_v63  ;;  %v542_v10 = vmax.f32 %v535_v3, 0.0 }
 0x1f8   :  { %v543_v9 = vmax.f32 %v537_v5, 0.0 }
 0x1f9   :  { %v544_v11 = vmax.f32 %v539_v7, 0.0 }
 0x1fa   :  { %v545_v12 = vpack.c.bf16 %v543_v9, %v541_v8 }
 0x1fb   :  { %v546_v13 = vpack.c.bf16 %v544_v11, %v542_v10 }
 0x1fd   :  { %783 = vmatprep.mubr.bf16.mxu0 %v546_v13 }
 0x1fe   :  { %784 = vmatmul.mubr.bf16.vlgmr.msra.gmra.mrb[4].mxu0 %v545_v12 }
 0x2d1   :  { %v785_v17 = vpop.f32.mrb[4].mxu0 }
 0x2d2   :  { %v786_v18 = vadd.f32 %v785_v17, %v584_v15  ;;  %v787_v19 = vpop.f32.mrb[5].mxu0 }
 0x2d3   :  { %v788_v20 = vadd.f32 %v787_v19, %v588_v16  ;;  %v789_v21 = vpop.f32.mrb[6].mxu0 }
 0x2d4   :  { %v794_v22 = vmax.f32 %v786_v18, 0.0  ;;  %v790_v23 = vadd.f32 %v789_v21, %v584_v15  ;;  %v791_v24 = vpop.f32.mrb[7].mxu0 }
 0x2d5   :  { %v795_v25 = vmax.f32 %v788_v20, 0.0  ;;  %v792_v26 = vadd.f32 %v791_v24, %v588_v16 }
 0x2d6   :  { %798 = vst [vmem:[#allocation3] sm:$0xff] %v794_v22  ;;  %v796_v27 = vmax.f32 %v790_v23, 0.0 }
 0x2d7   :  { %799 = vst [vmem:[#allocation3 + $0x8] sm:$0xff] %v795_v25  ;;  %v797_v28 = vmax.f32 %v792_v26, 0.0 }
 0x2d8   :  { %800 = vst [vmem:[#allocation3 + $0x10] sm:$0xff] %v796_v27 }
 0x2d9   :  { %801 = vst [vmem:[#allocation3 + $0x18] sm:$0xff] %v797_v28 }
 0x2da   :  { %806 = vsyncadd [#allocation4], 256  ;;  %s1087_s6 = smov [#allocation3]  }
 0x2db   :  { %s807_s29 = sshll.u32 %s1087_s6, 4  ;;  %s808_s29 = int_to_ptr.vmem [resolvable:$true] %s807_s29 }
 0x2dc   :  { %s1062_s30 = scalar_lea.vmem %s808_s29, 256  ;;  %s1066_s8 = scalar_lea.vmem %s808_s29, 512 }
 0x2dd   :  { %p1063_p0 = scmp.ne.s32.totalorder %s808_s29, %s1062_s30  ;;  %p1067_p1 = scmp.lt.s32.totalorder %s808_s29, %s808_s29 }
 0x2de   :  { %p1068_p2 = scmp.lt.s32.totalorder %s1066_s8, %s1062_s30 }
 0x2e0   :  { %p1069_p3 = por %p1068_p2, %p1067_p1 }
 0x2e2   :  { %p1070_p4 = pnand %p1069_p3, %p1063_p0 }
 0x2e4   :  { %1073 = shalt.err (!%p1070_p4)
}
 0x2e5   :  { %s1074_s11 = scalar_lea.hbm %s1467_s7, 256 }
 0x2e6   :  { %p1075_p5 = scmp.ne.s32.totalorder %s1467_s7, %s1074_s11  ;;  %p1078_p6 = scmp.lt.u32.totalorder %s1074_s11, %s1467_s7 }
 0x2e8   :  { %p1080_p7 = pnand %p1078_p6, %p1075_p5 }
 0x2ea   :  { %1083 = shalt.err (!%p1080_p7)
}
 0x2eb   :  { %s1088_s16 = smov 256   ;;  %s1089_s17 = smov 16  }
 0x2ec   :  { %813 = dma.vmem_to_hbm [thread:$0]  %s808_s29, 256, %s1467_s7, [#allocation4], %s1088_s16, %s1088_s16, %s1089_s17  }
 0x2ed   :  { %1084 = dma.done.wait [#allocation4], 512  }
 0x2ee   :  { %1085 = vsyncadd [#allocation4], 4294966784 }
 0x2ef   :  { %817 = vsyncpa [#allocation4], 1 }

</bundles_post_ra>
